<compile_context>
chip_gen: v5e
topology: v5e:2x2
jax: 0.10.0
libtpu: 0.0.40
codegen_flags: <defaults>
</compile_context>

<pallas_src>
import functools

import jax
import jax.numpy as jnp
from jax import lax
from jax.experimental import pallas as pl
from jax.experimental.pallas import tpu as pltpu

LANE = 128
BASE = 128  # aligned lane offset of the staged activation inside the scratch


def _round_up(x, m):
    return ((x + m - 1) // m) * m


# ----------------------------------------------------------------------------
# Fused decoder kernel: all layers, one grid step per (batch, row-block).
# Activations are (channels, flat_spatial): channels on sublanes, row-major
# flattened spatial on lanes.
# ----------------------------------------------------------------------------
def _decoder_kernel(*refs, mode, n_layers, H, W, TB):
    L = n_layers
    x_ref = refs[0]
    o_ref = refs[1 + 2 * L]
    rb = pl.program_id(1)
    TBW = TB * W

    if mode == "pixel":
        a = x_ref[...]                                    # (C0, TB*W) bf16
        for l in range(L):
            w_ref = refs[1 + 2 * l]                       # (cout, cin) bf16
            b_ref = refs[2 + 2 * l]                       # (cout, 1)  f32
            acc = jnp.dot(w_ref[...], a,
                          preferred_element_type=jnp.float32) + b_ref[...]
            if l < L - 1:
                a = jnp.maximum(acc, 0.0).astype(jnp.bfloat16)
            else:
                o_ref[...] = acc.astype(o_ref.dtype)      # lane-dense store
        return

    # ------------------------------- patch ---------------------------------
    act_sc = refs[2 + 2 * L]                              # (CMAX, LANES) bf16
    s_in = (TB + 2 * L) * W                               # layer-0 flat window
    start = rb * TBW
    if TBW % LANE == 0:
        start = pl.multiple_of(start, LANE)
    # Stage the row-haloed, row-major-flattened input window once.  All taps
    # below are static lane-offset slices of this scratch; out-of-window reads
    # (at most one lane on each side) are always masked off before use.
    cin = x_ref.shape[0]
    act_sc[0:cin, BASE:BASE + s_in] = x_ref[:, pl.ds(start, s_in)]

    for l in range(L):
        w_ref = refs[1 + 2 * l]                           # (9, cout, cin) bf16
        b_ref = refs[2 + 2 * l]                           # (cout, 1)     f32
        cout = b_ref.shape[0]
        s_out = s_in - 2 * W

        col = lax.broadcasted_iota(jnp.int32, (1, s_out), 1) % W
        not_left = col != 0                               # kw = -1 invalid here
        not_right = col != W - 1                          # kw = +1 invalid here

        acc = jnp.zeros((cout, s_out), jnp.float32)
        for kh in range(3):
            for kw in range(3):
                dw = kw - 1
                off = BASE + kh * W + dw                  # static, >= BASE - 1
                tap = act_sc[0:cin, off:off + s_out]      # (cin, s_out) bf16
                if dw == -1:
                    tap = jnp.where(not_left, tap, jnp.zeros_like(tap))
                elif dw == 1:
                    tap = jnp.where(not_right, tap, jnp.zeros_like(tap))
                acc = acc + jnp.dot(w_ref[kh * 3 + kw], tap,
                                    preferred_element_type=jnp.float32)
        acc = acc + b_ref[...]                            # (cout,1) lane-bcast

        if l == L - 1:
            o_ref[...] = acc.astype(o_ref.dtype)          # (nb_channels, TB*W)
        else:
            act = jnp.maximum(acc, 0.0)
            # Halo rows that fall outside the true image must be exactly zero:
            # they are the next layer's conv zero padding.
            halo = L - l - 1
            row = (lax.broadcasted_iota(jnp.int32, (1, s_out), 1) // W
                   + (rb * TB - halo))
            act = jnp.where((row >= 0) & (row < H), act, jnp.zeros_like(act))
            act_sc[0:cout, BASE:BASE + s_out] = act.astype(jnp.bfloat16)
            cin = cout
            s_in = s_out


# ----------------------------------------------------------------------------
# Row-block selection: largest divisor of H whose working set fits the budget,
# preferring blocks whose flat size is a lane multiple (lane-dense I/O).
# ----------------------------------------------------------------------------
def _pick_row_block(H, W, n_layers, mode, cmax, requested=None):
    if requested is not None:
        if H % requested != 0:
            raise ValueError("row_block must divide H")
        return requested
    halo = n_layers if mode == "patch" else 0
    budget = 8 * 2 ** 20

    def ws_bytes(tb):
        return (tb + 2 * halo) * W * cmax * (2 + 2 + 4)   # act + tap + acc

    divs = [d for d in range(1, H + 1) if H % d == 0]
    fits = [d for d in divs if ws_bytes(d) <= budget] or [1]
    pref = [d for d in fits if (d * W) % LANE == 0 or d == H]
    return max(pref) if pref else max(fits)


# ----------------------------------------------------------------------------
# Wrapper: weight packing (transposed, channel-padded intermediates only),
# BlockSpecs, single fused pallas_call.
# ----------------------------------------------------------------------------
def decoder_forward(x_nchw, params, mode, row_block=None):
    """Equivalent of Decoder.forward.  x_nchw: (N, nb_features, H, W) f32."""
    N, C0, H, W = x_nchw.shape
    L = len(params)

    # Pack weights as (taps, cout, cin) with cout/cin transposed so the kernel
    # layout is channels-on-sublanes.  Intermediate channels are padded to lane
    # multiples; the true first cin and last cout are kept (no HBM inflation).
    packed = []
    cin_p = C0
    cmax = C0
    for idx, (w, b) in enumerate(params):
        last = idx == L - 1
        if mode == "pixel":
            cin, cout = w.shape
            taps = w.reshape(1, cin, cout)
        else:                                   # HWIO (3, 3, cin, cout)
            _, _, cin, cout = w.shape
            taps = w.reshape(9, cin, cout)
        cout_p = cout if last else _round_up(cout, LANE)
        wt = jnp.zeros((taps.shape[0], cout_p, cin_p), jnp.float32)
        wt = wt.at[:, :cout, :cin].set(jnp.transpose(taps, (0, 2, 1)))
        if mode == "pixel":
            wt = wt[0]
        bt = jnp.zeros((cout_p, 1), jnp.float32).at[:cout, 0].set(b.reshape(-1))
        packed.append((wt.astype(jnp.bfloat16), bt))
        cin_p = cout_p
        if not last:
            cmax = max(cmax, cout_p)
    cout_last = cin_p

    TB = _pick_row_block(H, W, L, mode, cmax, row_block)
    n_rb = H // TB
    TBW = TB * W

    if mode == "patch":
        hp = H + 2 * L                          # L zero rows top + bottom
        xk = jnp.pad(x_nchw, ((0, 0), (0, 0), (L, L), (0, 0)))
        xk = xk.astype(jnp.bfloat16).reshape(N, C0, hp * W)
        x_spec = pl.BlockSpec((None, C0, hp * W), lambda n, r: (n, 0, 0))
        s_in0 = (TB + 2 * L) * W
        lanes = BASE + _round_up(s_in0 + 1, LANE)
        scratch_shapes = [pltpu.VMEM((cmax, lanes), jnp.bfloat16)]
        scratch_bytes = cmax * lanes * 2
        x_block_bytes = C0 * hp * W * 2
    else:
        xk = x_nchw.astype(jnp.bfloat16).reshape(N, C0, H * W)
        x_spec = pl.BlockSpec((None, C0, TBW), lambda n, r: (n, 0, r))
        s_in0 = TBW
        scratch_shapes = []
        scratch_bytes = 0
        x_block_bytes = C0 * TBW * 2

    in_specs = [x_spec]
    flat_inputs = [xk]
    for wt, bt in packed:
        # Constant index maps: fetched once and revisited across the grid.
        in_specs.append(pl.BlockSpec(wt.shape, lambda n, r, _nd=wt.ndim: (0,) * _nd))
        in_specs.append(pl.BlockSpec(bt.shape, lambda n, r: (0, 0)))
        flat_inputs += [wt, bt]

    out_spec = pl.BlockSpec((None, cout_last, TBW), lambda n, r: (n, 0, r))

    # Scoped-VMEM limit from the actual buffer sum (+50% headroom), clamped to
    # stay within v7x's 64 MiB physical VMEM.
    wb_bytes = sum(int(w.size) * 2 + int(b.size) * 4 for w, b in packed)
    work = cmax * s_in0 * (2 + 2 + 4)
    est = (2 * x_block_bytes + 2 * cout_last * TBW * 4 + 2 * wb_bytes
           + scratch_bytes + work)
    vmem_limit = int(min(64 * 2 ** 20, max(32 * 2 ** 20, 3 * est // 2)))

    kernel = functools.partial(_decoder_kernel, mode=mode, n_layers=L,
                               H=H, W=W, TB=TB)

    out = pl.pallas_call(
        kernel,
        out_shape=jax.ShapeDtypeStruct((N, cout_last, H * W), jnp.float32),
        grid_spec=pltpu.PrefetchScalarGridSpec(
            num_scalar_prefetch=0,
            grid=(N, n_rb),
            in_specs=in_specs,
            out_specs=out_spec,
            scratch_shapes=scratch_shapes,
        ),
        compiler_params=pltpu.CompilerParams(
            dimension_semantics=("parallel", "parallel"),
            vmem_limit_bytes=vmem_limit),
    )(*flat_inputs)

    return out.reshape(N, cout_last, H, W)      # free: row-major metadata reshape


# ----------------------------------------------------------------------------
# Deterministic synthetic parameters mirroring Decoder.build()'s channel plan.
# ----------------------------------------------------------------------------
def init_decoder_params(key, nb_features, nb_channels, nb_layers, mode):
    plan = []
    in_ch = nb_features
    out_ch = 64 * 2 ** (nb_layers - 2)
    for _ in range(nb_layers - 1):
        plan.append((in_ch, int(out_ch)))
        in_ch = int(out_ch)
        out_ch = out_ch // 2
    plan.append((in_ch, nb_channels))            # final layer, no activation

    params = []
    for (cin, cout) in plan:
        key, kw_, kb_ = jax.random.split(key, 3)
        if mode == "pixel":
            fan_in = cin
            w = jax.random.normal(kw_, (cin, cout), jnp.float32)
        else:
            fan_in = 9 * cin
            w = jax.random.normal(kw_, (3, 3, cin, cout), jnp.float32)  # HWIO
        scale = 1.0 / jnp.sqrt(jnp.float32(fan_in))
        b = jax.random.normal(kb_, (cout,), jnp.float32) * scale
        params.append((w * scale, b))
    return params


# ----------------------------------------------------------------------------
# Pure-JAX reference (lax.conv) with the same bf16-operand / f32-accum policy.
# ----------------------------------------------------------------------------
def decoder_reference(x_nchw, params, mode):
    x = jnp.transpose(x_nchw, (0, 2, 3, 1)).astype(jnp.bfloat16)   # NHWC bf16
    L = len(params)
    for idx, (w, b) in enumerate(params):
        if mode == "pixel":
            w4 = w.reshape(1, 1, *w.shape)
            pad = "VALID"
        else:
            w4 = w
            pad = "SAME"
        y = lax.conv_general_dilated(
            x, w4.astype(jnp.bfloat16), window_strides=(1, 1), padding=pad,
            dimension_numbers=("NHWC", "HWIO", "NHWC"),
            preferred_element_type=jnp.float32)
        y = y + b.reshape(1, 1, 1, -1)
        if idx < L - 1:
            x = jnp.maximum(y, 0.0).astype(jnp.bfloat16)
        else:
            x = y
    return jnp.transpose(x, (0, 3, 1, 2))


# ----------------------------------------------------------------------------
if __name__ == "__main__":
    # Decoder input is the feature map: batch=2, nb_features=8 channels, 16x16.
    # nb_layers=3 -> channel plan 8 -> 128 -> 64 -> nb_channels=4.
    N, H, W = 2, 16, 16
    nb_features, nb_channels, nb_layers = 8, 4, 3

    key = jax.random.PRNGKey(0)
    kx, kp = jax.random.split(key)
    x = jax.random.normal(kx, (N, nb_features, H, W), jnp.float32)

    for mode in ("pixel", "patch"):
        params = init_decoder_params(kp, nb_features, nb_channels, nb_layers, mode)
        ref = jax.block_until_ready(decoder_reference(x, params, mode))
        # row_block=8 forces 2 row blocks (exercises the shrinking halo and the
        # image-border masking); None lets the heuristic pick (whole image).
        for rb in (8, None):
            out = jax.block_until_ready(
                decoder_forward(x, params, mode, row_block=rb))
            assert out.shape == (N, nb_channels, H, W), out.shape
            err = jnp.max(jnp.abs(out - ref))
            assert jnp.allclose(out, ref, atol=2e-2, rtol=2e-2), (
                f"mismatch mode={mode} row_block={rb}: max abs err {err}")

    print("KERNEL_OK")
</pallas_src>

<mosaic_0001>
module attributes {stable_mosaic.version = 11 : i64} {
  func.func @_decoder_kernel(%arg0: i32, %arg1: i32, %arg2: memref<1x8x128xbf16, #tpu.memory_space<vmem>>, %arg3: memref<128x8xbf16, #tpu.memory_space<vmem>>, %arg4: memref<128x1xf32, #tpu.memory_space<vmem>>, %arg5: memref<128x128xbf16, #tpu.memory_space<vmem>>, %arg6: memref<128x1xf32, #tpu.memory_space<vmem>>, %arg7: memref<4x128xbf16, #tpu.memory_space<vmem>>, %arg8: memref<4x1xf32, #tpu.memory_space<vmem>>, %arg9: memref<1x4x128xf32, #tpu.memory_space<vmem>>) attributes {dimension_semantics = [#tpu.dimension_semantics<parallel>, #tpu.dimension_semantics<parallel>], iteration_bounds = array<i64: 2, 2>, scalar_prefetch = 0 : i64, scratch_operands = 0 : i64, tpu.core_type = #tpu.core_type<tc>, window_params = [{transform_indices = @transform_0, window_bounds = array<i64: 1, 8, 128>}, {pipeline_mode = #tpu.pipeline_mode<synchronous>, transform_indices = @transform_1, window_bounds = array<i64: 128, 8>}, {pipeline_mode = #tpu.pipeline_mode<synchronous>, transform_indices = @transform_2, window_bounds = array<i64: 128, 1>}, {pipeline_mode = #tpu.pipeline_mode<synchronous>, transform_indices = @transform_3, window_bounds = array<i64: 128, 128>}, {pipeline_mode = #tpu.pipeline_mode<synchronous>, transform_indices = @transform_4, window_bounds = array<i64: 128, 1>}, {pipeline_mode = #tpu.pipeline_mode<synchronous>, transform_indices = @transform_5, window_bounds = array<i64: 4, 128>}, {pipeline_mode = #tpu.pipeline_mode<synchronous>, transform_indices = @transform_6, window_bounds = array<i64: 4, 1>}, {transform_indices = @transform_7, window_bounds = array<i64: 1, 4, 128>}]} {
    %c0 = arith.constant 0 : index
    %c0_0 = arith.constant 0 : index
    %c0_1 = arith.constant 0 : index
    %0 = vector.load %arg2[%c0, %c0_0, %c0_1] : memref<1x8x128xbf16, #tpu.memory_space<vmem>>, vector<1x8x128xbf16>
    %1 = vector.shape_cast %0 : vector<1x8x128xbf16> to vector<8x128xbf16>
    %c0_2 = arith.constant 0 : index
    %c0_3 = arith.constant 0 : index
    %2 = vector.load %arg3[%c0_2, %c0_3] : memref<128x8xbf16, #tpu.memory_space<vmem>>, vector<128x8xbf16>
    %cst = arith.constant dense<0.000000e+00> : vector<128x128xf32>
    %3 = tpu.matmul %2, %1, %cst {dimension_numbers = #tpu.dot_dimension_numbers<[1], [0], [0], [1], [0, 0, 1, 1], [], []>} : vector<128x8xbf16>, vector<8x128xbf16>, vector<128x128xf32> -> vector<128x128xf32>
    %c0_4 = arith.constant 0 : index
    %c0_5 = arith.constant 0 : index
    %4 = vector.load %arg4[%c0_4, %c0_5] : memref<128x1xf32, #tpu.memory_space<vmem>>, vector<128x1xf32>
    %5 = vector.broadcast %4 : vector<128x1xf32> to vector<128x128xf32>
    %6 = arith.addf %3, %5 : vector<128x128xf32>
    %cst_6 = arith.constant 0.000000e+00 : f32
    %7 = vector.broadcast %cst_6 : f32 to vector<128x128xf32>
    %8 = arith.maximumf %6, %7 : vector<128x128xf32>
    %9 = arith.truncf %8 : vector<128x128xf32> to vector<128x128xbf16>
    %c0_7 = arith.constant 0 : index
    %c0_8 = arith.constant 0 : index
    %10 = vector.load %arg5[%c0_7, %c0_8] : memref<128x128xbf16, #tpu.memory_space<vmem>>, vector<128x128xbf16>
    %cst_9 = arith.constant dense<0.000000e+00> : vector<128x128xf32>
    %11 = tpu.matmul %10, %9, %cst_9 {dimension_numbers = #tpu.dot_dimension_numbers<[1], [0], [0], [1], [0, 0, 1, 1], [], []>} : vector<128x128xbf16>, vector<128x128xbf16>, vector<128x128xf32> -> vector<128x128xf32>
    %c0_10 = arith.constant 0 : index
    %c0_11 = arith.constant 0 : index
    %12 = vector.load %arg6[%c0_10, %c0_11] : memref<128x1xf32, #tpu.memory_space<vmem>>, vector<128x1xf32>
    %13 = vector.broadcast %12 : vector<128x1xf32> to vector<128x128xf32>
    %14 = arith.addf %11, %13 : vector<128x128xf32>
    %cst_12 = arith.constant 0.000000e+00 : f32
    %15 = vector.broadcast %cst_12 : f32 to vector<128x128xf32>
    %16 = arith.maximumf %14, %15 : vector<128x128xf32>
    %17 = arith.truncf %16 : vector<128x128xf32> to vector<128x128xbf16>
    %c0_13 = arith.constant 0 : index
    %c0_14 = arith.constant 0 : index
    %18 = vector.load %arg7[%c0_13, %c0_14] : memref<4x128xbf16, #tpu.memory_space<vmem>>, vector<4x128xbf16>
    %cst_15 = arith.constant dense<0.000000e+00> : vector<4x128xf32>
    %19 = tpu.matmul %18, %17, %cst_15 {dimension_numbers = #tpu.dot_dimension_numbers<[1], [0], [0], [1], [0, 0, 1, 1], [], []>} : vector<4x128xbf16>, vector<128x128xbf16>, vector<4x128xf32> -> vector<4x128xf32>
    %c0_16 = arith.constant 0 : index
    %c0_17 = arith.constant 0 : index
    %20 = vector.load %arg8[%c0_16, %c0_17] : memref<4x1xf32, #tpu.memory_space<vmem>>, vector<4x1xf32>
    %21 = vector.broadcast %20 : vector<4x1xf32> to vector<4x128xf32>
    %22 = arith.addf %19, %21 : vector<4x128xf32>
    %c0_18 = arith.constant 0 : index
    %c0_19 = arith.constant 0 : index
    %c0_20 = arith.constant 0 : index
    %23 = vector.load %arg9[%c0_18, %c0_19, %c0_20] : memref<1x4x128xf32, #tpu.memory_space<vmem>>, vector<1x4x128xf32>
    %24 = vector.shape_cast %23 : vector<1x4x128xf32> to vector<4x128xf32>
    %25 = vector.shape_cast %22 : vector<4x128xf32> to vector<1x4x128xf32>
    tpu.vector_store %arg9[%c0_18, %c0_19, %c0_20], %25 {strides = array<i32>} : memref<1x4x128xf32, #tpu.memory_space<vmem>>, vector<1x4x128xf32>,
    return
  }
  func.func @transform_0(%arg0: i32, %arg1: i32) -> (i32, i32, i32) {
    %c0_i32 = arith.constant 0 : i32
    %c0_i32_0 = arith.constant 0 : i32
    return %arg0, %c0_i32, %arg1 : i32, i32, i32
  }
  func.func @transform_1(%arg0: i32, %arg1: i32) -> (i32, i32) {
    %c0_i32 = arith.constant 0 : i32
    %c0_i32_0 = arith.constant 0 : i32
    %c0_i32_1 = arith.constant 0 : i32
    return %c0_i32, %c0_i32_0 : i32, i32
  }
  func.func @transform_2(%arg0: i32, %arg1: i32) -> (i32, i32) {
    %c0_i32 = arith.constant 0 : i32
    %c0_i32_0 = arith.constant 0 : i32
    %c0_i32_1 = arith.constant 0 : i32
    return %c0_i32, %c0_i32_0 : i32, i32
  }
  func.func @transform_3(%arg0: i32, %arg1: i32) -> (i32, i32) {
    %c0_i32 = arith.constant 0 : i32
    %c0_i32_0 = arith.constant 0 : i32
    %c0_i32_1 = arith.constant 0 : i32
    return %c0_i32, %c0_i32_0 : i32, i32
  }
  func.func @transform_4(%arg0: i32, %arg1: i32) -> (i32, i32) {
    %c0_i32 = arith.constant 0 : i32
    %c0_i32_0 = arith.constant 0 : i32
    %c0_i32_1 = arith.constant 0 : i32
    return %c0_i32, %c0_i32_0 : i32, i32
  }
  func.func @transform_5(%arg0: i32, %arg1: i32) -> (i32, i32) {
    %c0_i32 = arith.constant 0 : i32
    %c0_i32_0 = arith.constant 0 : i32
    %c0_i32_1 = arith.constant 0 : i32
    return %c0_i32, %c0_i32_0 : i32, i32
  }
  func.func @transform_6(%arg0: i32, %arg1: i32) -> (i32, i32) {
    %c0_i32 = arith.constant 0 : i32
    %c0_i32_0 = arith.constant 0 : i32
    %c0_i32_1 = arith.constant 0 : i32
    return %c0_i32, %c0_i32_0 : i32, i32
  }
  func.func @transform_7(%arg0: i32, %arg1: i32) -> (i32, i32, i32) {
    %c0_i32 = arith.constant 0 : i32
    %c0_i32_0 = arith.constant 0 : i32
    return %arg0, %c0_i32, %arg1 : i32, i32, i32
  }
}

</mosaic_0001>

<bundles_post_ra>
// kernel: tpu_custom_call.1
= control target key start
LH: loop header
LB: loop body
LE: loop exit
PB: predicated region body
PF: predicated region fallthrough
CT: control target
= control target key end

     0   :  { %12 = vsyncpa [#allocation3], 0  ;;  %s1516_s0 = inlined_call_operand.vmem [shape: bf16[2,8,256], index: 0, kind: input, shape index: {}]   ;;  %s1517_s1 = inlined_call_operand.vmem [shape: bf16[128,8], index: 1, kind: input, shape index: {}]   ;;  %s1518_s2 = inlined_call_operand.vmem [shape: f32[128,1], index: 2, kind: input, shape index: {}]   ;;  %s1519_s3 = inlined_call_operand.vmem [shape: bf16[128,128], index: 3, kind: input, shape index: {}]   ;;  %s1520_s4 = inlined_call_operand.vmem [shape: f32[128,1], index: 4, kind: input, shape index: {}]   ;;  %s1521_s5 = inlined_call_operand.vmem [shape: bf16[4,128], index: 5, kind: input, shape index: {}]   ;;  %s1522_s6 = inlined_call_operand.vmem [shape: f32[4,1], index: 6, kind: input, shape index: {}]   ;;  %s1523_s7 = inlined_call_operand.hbm [shape: f32[2,4,256], index: 7, kind: output, shape index: {}]  }
   0x1   :  { %14 = vsyncpa [#allocation3 + $0x1], 0  ;;  %s1230_s24 = smov 0   ;;  %s1232_s25 = smov 0  }
   0x2   :  { %s1234_s26 = smov 0   ;;  %s1236_s27 = smov 0  }
   0x3   :  { %s1238_s28 = smov 0   ;;  %s1240_s29 = smov 0  }
   0x4   :  { %s1242_s30 = smov 0   ;;  %s1244_s8 = smov 0  }
   0x5 LB: > { %1528 = sst [smem:[#allocation5_spill]] %s1179_s29  ;;  %s908_s9 = sadd.s32 4294967295, %s1187_s8   ;;  %s1187_s8 = sphi %s1244_s8, %s20_s8   ;;  %s1183_s30 = sphi %s1242_s30, %s1537_s30   ;;  %s1179_s29 = sphi %s1240_s29, %s1536_s29   ;;  %s1175_s28 = sphi %s1238_s28, %s1535_s28   ;;  %s1171_s27 = sphi %s1236_s27, %s1534_s27   ;;  %s1167_s26 = sphi %s1234_s26, %s1540_s26   ;;  %s1163_s25 = sphi %s1232_s25, %s1539_s25   ;;  %s1159_s24 = sphi %s1230_s24, %s1538_s24  }
   0x6   : > { %1529 = sst [smem:[#allocation6_spill]] %s1183_s30  ;;  %s909_s10 = sadd.s32 4294967294, %s1187_s8  }
   0x7   : > { %s29_s11 = sadd.s32 1, %s1179_s29  ;;  %s32_s12 = sadd.s32 1, %s1183_s30 }
   0x8   : > { %p30_p0 = scmp.ge.s32.totalorder %s29_s11, 2  ;;  %p205_p1 = scmp.ne.s32.totalorder %s1167_s26, %s1163_s25 }
   0x9   : > { %p206_p2 = scmp.eq.s32.totalorder %s908_s9, 3  ;;  %p211_p5 = scmp.ne.s32.totalorder %s1163_s25, %s1159_s24 }
   0xa   : > { %s1542_s11 = smov (%p30_p0, %s29_s11), 0  ;;  %s1544_s12 = smov (!%p30_p0, %s32_s12), %s1183_s30 }
   0xb   : > { %1530 = sst [smem:[#allocation7_spill]] %s1542_s11  ;;  %s191_s13 = ssub.s32 %s1179_s29, %s1542_s11 }
   0xc   : > { %p1281_p3 = por %p206_p2, %p205_p1  ;;  %p34_p4 = scmp.ge.s32.totalorder %s1544_s12, 2 }
   0xd   : > { %p212_p6 = scmp.eq.s32.totalorder %s909_s10, 3  ;;  %p912_p7 = scmp.ge.s32.totalorder %s1187_s8, 1 }
   0xe   : > { %s1546_s12 = smov (%p34_p4, %s1544_s12), 0  ;;  %p259_p9 = scmp.lt.s32.totalorder %s1187_s8, 5 }
   0xf   : > { %1532 = sst [smem:[#allocation8_spill]] %s1546_s12  ;;  %p1290_p8 = por %p212_p6, %p211_p5 }
  0x10   : > { %s190_s16 = ssub.s32 %s1183_s30, %s1546_s12  ;;  %s195_s17 = sadd.s32 1, %s1167_s26 }
  0x11   : > { %s192_s18 = sor.u32 %s191_s13, %s190_s16  ;;  %p260_p10 = pnand %p912_p7, %p259_p9 }
  0x12   : > { %p193_p11 = scmp.eq.s32.totalorder %s192_s18, 0  ;;  %p294_p12 = scmp.lt.s32.totalorder (!%p260_p10), %s1175_s28, 1 }
  0x13   : > { %263 = sbr.rel (%p260_p10) target bundleno = 644 (0x284), region = 48  ;;  %p296_p13 = scmp.lt.s32.totalorder (!%p260_p10), %s1171_s27, 1 }
  0x14   : > { %s1299_s19 = scalar_select %p193_p11, %s1167_s26, %s195_s17  }
  0x15   : > { %s291_s30 = sand.u32 (!%p260_p10), 1, %s1163_s25  }
  0x18   : > { %v334_v0 = vld [vmem:[%s1518_s2 + $0x70] sm:$0xff]  ;;  %v1189_v1 = vmov 0   ;;  %v332_v2 = vld [vmem:[%s1518_s2 + $0x60] sm:$0xff]  ;;  %s295_s13 = scalar_select %p294_p12, %s1175_s28, 1  ;;  %vm481_vm0 = vcmask 1043456   ;;  %v335_v4 = vld [vmem:[%s1518_s2 + $0x78] sm:$0xff] }
  0x19   : > { %1090 = vset.pattern.permute.xlu0 %v1189_v1  ;;  %1092 = vset.pattern.permute.xlu2 %v1189_v1  ;;  %v330_v3 = vld [vmem:[%s1518_s2 + $0x50] sm:$0xff]  ;;  %s297_s16 = scalar_select %p296_p13, %s1171_s27, 1  ;;  %v333_v6 = vld [vmem:[%s1518_s2 + $0x68] sm:$0xff]  ;;  %v331_v7 = vld [vmem:[%s1518_s2 + $0x58] sm:$0xff]  ;;  %vm456_vm1 = vcmask 64512  }
  0x1a   : > { %408 = vperm.xlu0 %1090, %v334_v0   ;;  %1091 = vset.pattern.permute.xlu1 %v1189_v1  ;;  %s914_s17 = sshll.u32 %s295_s13, 1  ;;  %v993_v9 = vld [vmem:[%s1517_s1] sm:$0xff]  ;;  %v999_v10 = vld [vmem:[%s1517_s1 + $0x30] sm:$0xff]  ;;  %v329_v12 = vld [vmem:[%s1518_s2 + $0x48] sm:$0xff] }
  0x1b   : > { %398 = vperm.xlu1 %1091, %v332_v2   ;;  %388 = vperm.xlu2 %1092, %v330_v3   ;;  %s299_s18 = sadd.s32 %s914_s17, %s297_s16  ;;  %v328_v11 = vld [vmem:[%s1518_s2 + $0x40] sm:$0xff]  ;;  %v326_v13 = vld [vmem:[%s1518_s2 + $0x30] sm:$0xff]  ;;  %v327_v14 = vld [vmem:[%s1518_s2 + $0x38] sm:$0xff]  ;;  %s989_s17 = sshll.u32 %s1175_s28, 1 }
  0x1c   : > { %s915_s20 = sshll.u32 %s299_s18, 2  ;;  %v325_v15 = vld [vmem:[%s1518_s2 + $0x28] sm:$0xff]  ;;  %v324_v16 = vld [vmem:[%s1518_s2 + $0x20] sm:$0xff]  ;;  %v1000_v18 = vld [vmem:[%s1517_s1 + $0x38] sm:$0xff]  ;;  %s823_s29 = sadd.s32 %s1171_s27, %s989_s17 }
  0x1d   : > { %s301_s11 = scalar_lea.vmem %s1516_s0, %s915_s20  ;;  %v994_v17 = vld [vmem:[%s1517_s1 + $0x8] sm:$0xff]  ;;  %v322_v19 = vld [vmem:[%s1518_s2 + $0x10] sm:$0xff]  ;;  %v323_v20 = vld [vmem:[%s1518_s2 + $0x18] sm:$0xff]  ;;  %s990_s18 = sshll.u32 %s823_s29, 2 }
  0x1e   : > { %v303_v5 = vld [vmem:[%s301_s11] sm:$0xf]  ;;  %v321_v22 = vld [vmem:[%s1518_s2 + $0x8] sm:$0xff]  ;;  %v588_v23 = vld [vmem:[%s1520_s4 + $0x70] sm:$0xff]  ;;  %s913_s20 = sshll.u32 %s291_s30, 2  ;;  %s825_s23 = scalar_lea.hbm %s1523_s7, %s990_s18 }
  0x1f   : > { %v483_v8 = vsel %vm481_vm0, %v303_v5, 0  ;;  %v320_v21 = vld [vmem:[%s1518_s2] sm:$0xff]  ;;  %v995_v24 = vld [vmem:[%s1517_s1 + $0x10] sm:$0xff]  ;;  %v589_v25 = vld [vmem:[%s1520_s4 + $0x78] sm:$0xff]  ;;  %s293_s9 = scalar_lea.vmem [#allocation2], %s913_s20  ;;  %s829_s13 = sshll.u32 %s825_s23, 4  ;;  %s830_s13 = int_to_ptr.hbm [resolvable:$true] %s829_s13 }
  0x20   : > { %492 = vmatpush.bf16.msra.mxu0 %v483_v8  ;;  %1009 = vmatpush.bf16.msra.mxu2 %v483_v8  ;;  %v586_v26 = vld [vmem:[%s1520_s4 + $0x60] sm:$0xff]  ;;  %v587_v27 = vld [vmem:[%s1520_s4 + $0x68] sm:$0xff]  ;;  %v584_v28 = vld [vmem:[%s1520_s4 + $0x50] sm:$0xff]  ;;  %s827_s10 = sshll.u32 %s293_s9, 4  ;;  %s813_s16 = scalar_lea.sflag [#allocation3], %s291_s30  ;;  %s828_s10 = int_to_ptr.vmem [resolvable:$true] %s827_s10 }
  0x21   : > { %v585_v29 = vld [vmem:[%s1520_s4 + $0x58] sm:$0xff]  ;;  %v582_v30 = vld [vmem:[%s1520_s4 + $0x40] sm:$0xff]  ;;  %v583_v32 = vld [vmem:[%s1520_s4 + $0x48] sm:$0xff]  ;;  %s1107_s28 = sshra.s32 %s830_s13, 4  ;;  %s1113_s17 = scalar_lea.hbm %s1523_s7, 16  ;;  %s1108_s28 = int_to_ptr.hbm [resolvable:$true] %s1107_s28 }
  0x22   : > { %413 = vperm.xlu0 %1090, %v335_v4   ;;  %v996_v31 = vld [vmem:[%s1517_s1 + $0x18] sm:$0xff]  ;;  %v580_v33 = vld [vmem:[%s1520_s4 + $0x30] sm:$0xff]  ;;  %v578_v35 = vld [vmem:[%s1520_s4 + $0x20] sm:$0xff]  ;;  %s1109_s27 = scalar_lea.hbm %s1108_s28, 4  ;;  %p1114_p4 = scmp.lt.s32.totalorder %s1108_s28, %s1523_s7 }
  0x23   : > { %403 = vperm.xlu1 %1091, %v333_v6   ;;  %393 = vperm.xlu2 %1092, %v331_v7   ;;  %v581_v34 = vld [vmem:[%s1520_s4 + $0x38] sm:$0xff]  ;;  %v579_v36 = vld [vmem:[%s1520_s4 + $0x28] sm:$0xff]  ;;  %v576_v37 = vld [vmem:[%s1520_s4 + $0x10] sm:$0xff]  ;;  %p1110_p0 = scmp.ne.s32.totalorder %s1108_s28, %s1109_s27  ;;  %p1115_p5 = scmp.lt.s32.totalorder %s1113_s17, %s1109_s27 }
  0x24   : > { %948 = vmatmul.msk.bf16.vlgmr.msra.gmra.mxu0 %vm456_vm1, %v993_v9  ;;  %954 = vmatmul.msk.bf16.vlgmr.msra.gmra.mxu2 %vm456_vm1, %v999_v10  ;;  %v997_v38 = vld [vmem:[%s1517_s1 + $0x20] sm:$0xff]  ;;  %v575_v40 = vld [vmem:[%s1520_s4 + $0x8] sm:$0xff]  ;;  %v577_v41 = vld [vmem:[%s1520_s4 + $0x18] sm:$0xff] }
  0x25   : > { %v574_v39 = vld [vmem:[%s1520_s4] sm:$0xff]  ;;  %v998_v42 = vld [vmem:[%s1517_s1 + $0x28] sm:$0xff]  ;;  %p1111_p1 = pnand %p1110_p0, %p1281_p3  ;;  %p1116_p6 = por %p1115_p5, %p1114_p4 }
  0x26   : > { %v792_v43 = vld [vmem:[%s1522_s6] sm:$0xf] }
  0x27   : > { %p1112_p2 = pneg %p1111_p1 }
  0x29   : > { %p1117_p7 = pnand %p1116_p6, %p1112_p2 }
  0x2a   : > { %378 = vperm.xlu0 %1090, %v328_v11  }
  0x2b   : > { %383 = vperm.xlu1 %1091, %v329_v12   ;;  %368 = vperm.xlu2 %1092, %v326_v13  }
  0x32   : > { %373 = vperm.xlu0 %1090, %v327_v14  }
  0x33   : > { %363 = vperm.xlu2 %1092, %v325_v15   ;;  %358 = vperm.xlu1 %1091, %v324_v16  }
  0x34   : > { %949 = vmatmul.msk.bf16.gmra.mxu0 %vm456_vm1, %v994_v17  ;;  %955 = vmatmul.msk.bf16.gmra.mxu2 %vm456_vm1, %v1000_v18 }
  0x3a   : > { %348 = vperm.xlu0 %1090, %v322_v19  }
  0x3b   : > { %353 = vperm.xlu1 %1091, %v323_v20   ;;  %338 = vperm.xlu2 %1092, %v320_v21  }
  0x42   : > { %343 = vperm.xlu0 %1090, %v321_v22  }
  0x43   : > { %662 = vperm.xlu1 %1091, %v588_v23   ;;  %667 = vperm.xlu2 %1092, %v589_v25  }
  0x44   : > { %950 = vmatmul.msk.bf16.gmra.mxu0 %vm456_vm1, %v995_v24 }
  0x4a   : > { %652 = vperm.xlu0 %1090, %v586_v26  }
  0x4b   : > { %657 = vperm.xlu1 %1091, %v587_v27   ;;  %642 = vperm.xlu2 %1092, %v584_v28  }
  0x52   : > { %647 = vperm.xlu0 %1090, %v585_v29  }
  0x53   : > { %632 = vperm.xlu1 %1091, %v582_v30   ;;  %637 = vperm.xlu2 %1092, %v583_v32  }
  0x54   : > { %951 = vmatmul.msk.bf16.gmra.mxu0 %vm456_vm1, %v996_v31 }
  0x5a   : > { %622 = vperm.xlu0 %1090, %v580_v33  }
  0x5b   : > { %627 = vperm.xlu1 %1091, %v581_v34   ;;  %612 = vperm.xlu2 %1092, %v578_v35  }
  0x62   : > { %617 = vperm.xlu0 %1090, %v579_v36  }
  0x63   : > { %602 = vperm.xlu1 %1091, %v576_v37   ;;  %607 = vperm.xlu2 %1092, %v577_v41  }
  0x64   : > { %952 = vmatmul.msk.bf16.gmra.mxu0 %vm456_vm1, %v997_v38 }
  0x6a   : > { %592 = vperm.xlu0 %1090, %v574_v39  }
  0x6b   : > { %597 = vperm.xlu1 %1091, %v575_v40   ;;  %795 = vperm.xlu2 %1092, %v792_v43  }
  0x74   : > { %953 = vmatmul.msk.bf16.gmra.mxu0 %vm456_vm1, %v998_v42 }
  0x75   : > { %v389_v44 = vpop.permute.xlu2 %388 }
  0x7d   : > { %v394_v47 = vpop.permute.xlu2 %393 }
  0x85   : > { %v369_v50 = vpop.permute.xlu2 %368 }
  0x8c   : > { %v409_v45 = vpop.permute.xlu0 %408 }
  0x8d   : > { %v399_v46 = vpop.permute.xlu1 %398  ;;  %v364_v55 = vpop.permute.xlu2 %363 }
  0x94   : > { %v414_v48 = vpop.permute.xlu0 %413 }
  0x95   : > { %v404_v49 = vpop.permute.xlu1 %403  ;;  %v339_v60 = vpop.permute.xlu2 %338 }
  0x9c   : > { %v379_v51 = vpop.permute.xlu0 %378 }
  0x9d   : > { %v384_v54 = vpop.permute.xlu1 %383 }
  0xa1   : > { %v494_v52 = vpop.f32.mrf.mxu0 }
  0xa2   : > { %v495_v63 = vadd.f32 %v494_v52, %v339_v60 }
  0xa4   : > { %v374_v53 = vpop.permute.xlu0 %373  ;;  %v534_v2 = vmax.f32 %v495_v63, 0.0 }
  0xa5   : > { %v359_v59 = vpop.permute.xlu1 %358 }
  0xa7   : > { %v524_v57 = vpop.f32.mrf.mxu2 }
  0xa8   : > { %v525_v14 = vadd.f32 %v524_v57, %v399_v46  ;;  %v1007_v57 = vld [vmem:[%s1519_s3 + $0x30] sm:$0xff] }
  0xa9   : > { %v496_v56 = vpop.f32.mrf.mxu0 }
  0xaa   : > { %v546_v20 = vmax.f32 %v525_v14, 0.0 }
  0xac   : > { %v349_v58 = vpop.permute.xlu0 %348 }
  0xad   : > { %v354_v4 = vpop.permute.xlu1 %353 }
  0xaf   : > { %v526_v62 = vpop.f32.mrf.mxu2 }
  0xb0   : > { %v527_v15 = vadd.f32 %v526_v62, %v404_v49 }
  0xb1   : > { %v499_v61 = vpop.f32.mrf.mxu0 }
  0xb2   : > { %v500_v5 = vadd.f32 %v499_v61, %v349_v58  ;;  %v547_v21 = vmax.f32 %v527_v15, 0.0  ;;  %v1004_v58 = vld [vmem:[%s1519_s3 + $0x18] sm:$0xff] }
  0xb4   : > { %v344_v0 = vpop.permute.xlu0 %343  ;;  %v536_v10 = vmax.f32 %v500_v5, 0.0  ;;  %v556_v24 = vpack.c.bf16 %v547_v21, %v546_v20 }
  0xb5   : > { %v497_v1 = vadd.f32 %v496_v56, %v344_v0  ;;  %v1003_v56 = vld [vmem:[%s1519_s3 + $0x10] sm:$0xff] }
  0xb7   : > { %v535_v3 = vmax.f32 %v497_v1, 0.0  ;;  %v529_v8 = vpop.f32.mrf.mxu2 }
  0xb8   : > { %v530_v12 = vadd.f32 %v529_v8, %v409_v45 }
  0xb9   : > { %v550_v6 = vpack.c.bf16 %v535_v3, %v534_v2  ;;  %v501_v7 = vpop.f32.mrf.mxu0 }
  0xba   : > { %v502_v9 = vadd.f32 %v501_v7, %v354_v4  ;;  %v548_v18 = vmax.f32 %v530_v12, 0.0  ;;  %v663_v4 = vpop.permute.xlu1 %662 }
  0xbc   : > { %v537_v11 = vmax.f32 %v502_v9, 0.0 }
  0xbe   : > { %v551_v13 = vpack.c.bf16 %v537_v11, %v536_v10  ;;  %v653_v10 = vpop.permute.xlu0 %652 }
  0xbf   : > { %v531_v17 = vpop.f32.mrf.mxu2 }
  0xc0   : > { %v532_v19 = vadd.f32 %v531_v17, %v414_v48 }
  0xc1   : > { %v504_v16 = vpop.f32.mrf.mxu0 }
  0xc2   : > { %v549_v22 = vmax.f32 %v532_v19, 0.0  ;;  %v505_v48 = vadd.f32 %v504_v16, %v359_v59  ;;  %v1008_v59 = vld [vmem:[%s1519_s3 + $0x38] sm:$0xff]  ;;  %v658_v8 = vpop.permute.xlu1 %657 }
  0xc4   : > { %v557_v23 = vpack.c.bf16 %v549_v22, %v548_v18 }
  0xc6   : > { %718 = vmatpush.bf16.msra.mxu1 %v557_v23  ;;  %1010 = vmatpush.bf16.msra.mxu3 %v557_v23  ;;  %v648_v15 = vpop.permute.xlu0 %647 }
  0xc9   : > { %v506_v25 = vpop.f32.mrf.mxu0 }
  0xca   : > { %719 = vmatpush.bf16.msra.mxu1 %v556_v24  ;;  %1011 = vmatpush.bf16.msra.mxu3 %v556_v24  ;;  %v507_v43 = vadd.f32 %v506_v25, %v364_v55  ;;  %v1006_v55 = vld [vmem:[%s1519_s3 + $0x28] sm:$0xff]  ;;  %v633_v14 = vpop.permute.xlu1 %632 }
  0xd1   : > { %v509_v26 = vpop.f32.mrf.mxu0 }
  0xd2   : > { %v510_v41 = vadd.f32 %v509_v26, %v369_v50  ;;  %v1001_v50 = vld [vmem:[%s1519_s3] sm:$0xff]  ;;  %v628_v25 = vpop.permute.xlu1 %627 }
  0xd4   : > { %v540_v49 = vmax.f32 %v510_v41, 0.0 }
  0xd9   : > { %v511_v27 = vpop.f32.mrf.mxu0 }
  0xda   : > { %v512_v38 = vadd.f32 %v511_v27, %v374_v53  ;;  %v1005_v53 = vld [vmem:[%s1519_s3 + $0x20] sm:$0xff] }
  0xdc   : > { %v541_v45 = vmax.f32 %v512_v38, 0.0 }
  0xde   : > { %v553_v52 = vpack.c.bf16 %v541_v45, %v540_v49 }
  0xe1   : > { %v514_v28 = vpop.f32.mrf.mxu0 }
  0xe2   : > { %v515_v35 = vadd.f32 %v514_v28, %v379_v51 }
  0xe4   : > { %v542_v42 = vmax.f32 %v515_v35, 0.0 }
  0xe9   : > { %v516_v29 = vpop.f32.mrf.mxu0 }
  0xea   : > { %v517_v33 = vadd.f32 %v516_v29, %v384_v54  ;;  %v1002_v54 = vld [vmem:[%s1519_s3 + $0x8] sm:$0xff]  ;;  %v623_v29 = vpop.permute.xlu0 %622 }
  0xec   : > { %v543_v39 = vmax.f32 %v517_v33, 0.0 }
  0xee   : > { %v554_v46 = vpack.c.bf16 %v543_v39, %v542_v42  ;;  %v603_v42 = vpop.permute.xlu1 %602 }
  0xf1   : > { %v519_v30 = vpop.f32.mrf.mxu0 }
  0xf2   : > { %v520_v31 = vadd.f32 %v519_v30, %v389_v44  ;;  %v539_v44 = vmax.f32 %v507_v43, 0.0 }
  0xf4   : > { %v544_v36 = vmax.f32 %v520_v31, 0.0 }
  0xf9   : > { %v521_v32 = vpop.f32.mrf.mxu0 }
  0xfa   : > { %v522_v34 = vadd.f32 %v521_v32, %v394_v47  ;;  %v538_v47 = vmax.f32 %v505_v48, 0.0 }
  0xfc   : > { %v545_v37 = vmax.f32 %v522_v34, 0.0  ;;  %v552_v51 = vpack.c.bf16 %v539_v44, %v538_v47 }
  0xfe   : > { %v555_v40 = vpack.c.bf16 %v545_v37, %v544_v36 }
 0x100   : > { %720 = vmatpush.bf16.msra.mxu1 %v555_v40  ;;  %1012 = vmatpush.bf16.msra.mxu3 %v555_v40 }
 0x104   : > { %721 = vmatpush.bf16.msra.mxu1 %v554_v46  ;;  %1013 = vmatpush.bf16.msra.mxu3 %v554_v46  ;;  %v618_v46 = vpop.permute.xlu0 %617 }
 0x108   : > { %722 = vmatpush.bf16.msra.mxu1 %v553_v52  ;;  %1014 = vmatpush.bf16.msra.mxu3 %v553_v52 }
 0x10c   : > { %723 = vmatpush.bf16.msra.mxu1 %v552_v51  ;;  %1015 = vmatpush.bf16.msra.mxu3 %v552_v51 }
 0x110   : > { %724 = vmatpush.bf16.msra.mxu1 %v551_v13  ;;  %1016 = vmatpush.bf16.msra.mxu3 %v551_v13 }
 0x114   : > { %725 = vmatpush.bf16.msra.mxu1 %v550_v6  ;;  %1017 = vmatpush.bf16.msra.mxu3 %v550_v6  ;;  %v668_v6 = vpop.permute.xlu2 %667 }
 0x117   : > { %726 = vmatmul.bf16.vlgmr.msra.gmra.mxu1 %v1001_v50  ;;  %746 = vmatmul.bf16.vlgmr.msra.gmra.mxu3 %v1005_v53 }
 0x11c   : > { %v643_v11 = vpop.permute.xlu2 %642 }
 0x124   : > { %v638_v16 = vpop.permute.xlu2 %637 }
 0x127   : > { %731 = vmatmul.bf16.gmra.mxu1 %v1002_v54  ;;  %751 = vmatmul.bf16.gmra.mxu3 %v1006_v55 }
 0x12c   : > { %v613_v35 = vpop.permute.xlu2 %612 }
 0x134   : > { %v608_v51 = vpop.permute.xlu2 %607 }
 0x137   : > { %736 = vmatmul.bf16.gmra.mxu1 %v1003_v56  ;;  %756 = vmatmul.bf16.gmra.mxu3 %v1007_v57  ;;  %v598_v57 = vpop.permute.xlu1 %597 }
 0x147   : > { %741 = vmatmul.bf16.gmra.mxu1 %v1004_v58  ;;  %761 = vmatmul.bf16.gmra.mxu3 %v1008_v59 }
 0x194   : > { %v1463_v60 = vpop.f32.mrf.mxu1 }
 0x19a   : > { %v747_v61 = vpop.f32.mrf.mxu3 }
 0x19b   : > { %v748_v37 = vadd.f32 %v747_v61, %v633_v14 }
 0x19c   : > { %v1465_v62 = vpop.f32.mrf.mxu1 }
 0x19d   : > { %v775_v43 = vmax.f32 %v748_v37, 0.0  ;;  %v730_v58 = vadd.f32 %v1465_v62, %v598_v57 }
 0x1a2   : > { %v749_v63 = vpop.f32.mrf.mxu3 }
 0x1a3   : > { %v750_v32 = vadd.f32 %v749_v63, %v638_v16  ;;  %v593_v63 = vpop.permute.xlu0 %592 }
 0x1a4   : > { %v732_v0 = vpop.f32.mrf.mxu1 }
 0x1a5   : > { %v776_v39 = vmax.f32 %v750_v32, 0.0  ;;  %v733_v55 = vadd.f32 %v732_v0, %v603_v42 }
 0x1a7   : > { %v787_v44 = vpack.c.bf16 %v776_v39, %v775_v43 }
 0x1aa   : > { %v752_v1 = vpop.f32.mrf.mxu3 }
 0x1ab   : > { %v753_v30 = vadd.f32 %v752_v1, %v643_v11  ;;  %v728_v1 = vadd.f32 %v1463_v60, %v593_v63  ;;  %v796_v60 = vpop.permute.xlu2 %795 }
 0x1ac   : > { %v734_v3 = vpop.f32.mrf.mxu1 }
 0x1ad   : > { %v777_v38 = vmax.f32 %v753_v30, 0.0  ;;  %v735_v50 = vadd.f32 %v734_v3, %v608_v51 }
 0x1af   : > { %v770_v59 = vmax.f32 %v735_v50, 0.0 }
 0x1b2   : > { %v754_v2 = vpop.f32.mrf.mxu3 }
 0x1b3   : > { %v755_v26 = vadd.f32 %v754_v2, %v648_v15  ;;  %v769_v2 = vmax.f32 %v733_v55, 0.0 }
 0x1b4   : > { %v737_v7 = vpop.f32.mrf.mxu1 }
 0x1b5   : > { %v778_v33 = vmax.f32 %v755_v26, 0.0  ;;  %v738_v52 = vadd.f32 %v737_v7, %v613_v35  ;;  %v784_v3 = vpack.c.bf16 %v770_v59, %v769_v2 }
 0x1b7   : > { %v788_v41 = vpack.c.bf16 %v778_v33, %v777_v38  ;;  %v771_v56 = vmax.f32 %v738_v52, 0.0 }
 0x1ba   : > { %v757_v5 = vpop.f32.mrf.mxu3 }
 0x1bb   : > { %v758_v22 = vadd.f32 %v757_v5, %v653_v10  ;;  %v767_v5 = vmax.f32 %v728_v1, 0.0 }
 0x1bc   : > { %v739_v12 = vpop.f32.mrf.mxu1 }
 0x1bd   : > { %v779_v31 = vmax.f32 %v758_v22, 0.0  ;;  %v740_v48 = vadd.f32 %v739_v12, %v618_v46 }
 0x1bf   : > { %v772_v53 = vmax.f32 %v740_v48, 0.0 }
 0x1c1   : > { %v785_v61 = vpack.c.bf16 %v772_v53, %v771_v56 }
 0x1c2   : > { %v759_v9 = vpop.f32.mrf.mxu3 }
 0x1c3   : > { %v760_v20 = vadd.f32 %v759_v9, %v658_v8 }
 0x1c4   : > { %v742_v18 = vpop.f32.mrf.mxu1 }
 0x1c5   : > { %v780_v27 = vmax.f32 %v760_v20, 0.0  ;;  %v743_v45 = vadd.f32 %v742_v18, %v623_v29 }
 0x1c7   : > { %v789_v34 = vpack.c.bf16 %v780_v27, %v779_v31  ;;  %v773_v47 = vmax.f32 %v743_v45, 0.0 }
 0x1ca   : > { %v762_v13 = vpop.f32.mrf.mxu3 }
 0x1cb   : > { %v763_v17 = vadd.f32 %v762_v13, %v663_v4  ;;  %v768_v4 = vmax.f32 %v730_v58, 0.0 }
 0x1cc   : > { %v744_v36 = vpop.f32.mrf.mxu1 }
 0x1cd   : > { %v781_v23 = vmax.f32 %v763_v17, 0.0  ;;  %v745_v40 = vadd.f32 %v744_v36, %v628_v25  ;;  %v783_v0 = vpack.c.bf16 %v768_v4, %v767_v5 }
 0x1cf   : > { %v774_v49 = vmax.f32 %v745_v40, 0.0 }
 0x1d1   : > { %v786_v54 = vpack.c.bf16 %v774_v49, %v773_v47 }
 0x1d2   : > { %v764_v19 = vpop.f32.mrf.mxu3 }
 0x1d3   : > { %v765_v21 = vadd.f32 %v764_v19, %v668_v6  ;;  %v791_v6 = vld [vmem:[%s1521_s5] sm:$0x3] }
 0x1d5   : > { %v782_v24 = vmax.f32 %v765_v21, 0.0 }
 0x1d7   : > { %v790_v28 = vpack.c.bf16 %v782_v24, %v781_v23 }
 0x1d9   : > { %798 = vmatpush.bf16.msrb.mxu2 %v790_v28 }
 0x1dd   : > { %799 = vmatpush.bf16.msrb.mxu2 %v789_v34 }
 0x1e1   : > { %800 = vmatpush.bf16.msrb.mxu2 %v788_v41 }
 0x1e5   : > { %801 = vmatpush.bf16.msrb.mxu2 %v787_v44 }
 0x1e9   : > { %802 = vmatpush.bf16.msrb.mxu2 %v786_v54 }
 0x1ed   : > { %803 = vmatpush.bf16.msrb.mxu2 %v785_v61 }
 0x1f1   : > { %804 = vmatpush.bf16.msrb.mxu2 %v784_v3 }
 0x1f5   : > { %805 = vmatpush.bf16.msrb.mxu2 %v783_v0 }
 0x1f8   : > { %806 = vmatmul.bf16.vlgmr.msrb.gmra.mxu2 %v791_v6 }
 0x27b   : > { %v807_v62 = vpop.f32.mrf.mxu2 }
 0x27c   : > { %v808_v7 = vadd.f32 %v807_v62, %v796_v60 }
 0x27e   : > { %811 = vst [vmem:[%s293_s9] sm:$0xf] %v808_v7 }
 0x27f   : > { %1120 = shalt.err (!%p1117_p7)
}
 0x280   : > { %1018 = dma.vmem_to_hbm [thread:$0]  (%p1281_p3), %s828_s10, 64, %s830_s13, %s813_s16  }
 0x283   : > { %v809_v8 = vpop.f32.mrf.mxu2 }
 0x284 PF: > { %p1024_p9 = scmp.ge.s32.totalorder %s1187_s8, 2  ;;  %s841_s30 = sand.u32 1, %s1159_s24  }
 0x285   : > { %s842_s20 = scalar_lea.sflag [#allocation3], %s841_s30 }
 0x286   : > { %p1021_p10 = pnand %p1024_p9, %p1290_p8 }
 0x288   : > { %p1022_p11 = pneg %p1021_p10 }
 0x28a   : > { %1154 = dma.done.wait (%p1022_p11), %s842_s20, 64  }
 0x28b   : > { %1156 = vsyncadd (%p1022_p11), %s842_s20, 4294967232  ;;  %s20_s8 = sadd.s32 1, %s1187_s8   ;;  %s1534_s27 = sld [smem:[#allocation5_spill]] }
 0x28c   : > { %p17_p12 = scmp.ge.s32.totalorder %s20_s8, 6   ;;  %s1535_s28 = sld [smem:[#allocation6_spill]] }
 0x28d   : > { %s1536_s29 = sld [smem:[#allocation7_spill]]  ;;  %s1538_s24 = smov %s1163_s25 }
 0x28e   : > { %s1537_s30 = sld [smem:[#allocation8_spill]]  ;;  %s1539_s25 = smov %s1167_s26 }
 0x28f   : > { %s1540_s26 = smov %s1299_s19  ;;  %19 = sbr.rel (!%p17_p12) target bundleno = 5 (0x5), region = 83 }
 0x294   :  { %848 = vsyncpa [#allocation3], 1 }
 0x295   :  { %850 = vsyncpa [#allocation3 + $0x1], 1 }

</bundles_post_ra>
